<compile_context>
chip_gen: v6e
topology: v6e:2x2x1
jax: 0.10.0
libtpu: 0.0.40
codegen_flags: <defaults>
</compile_context>

<pallas_src>
import functools

import jax
import jax.numpy as jnp
from jax.experimental import pallas as pl
from jax.experimental.pallas import tpu as pltpu

_LANE = 128


def _round_up(n, m):
    return ((n + m - 1) // m) * m


def _mlp_kernel(x_ref, w1_ref, b1_ref, w2_ref, b2_ref, w3_ref, b3_ref,
                o_ref, *, tau):
    # Compute dtype follows the (pre-cast) weights: bf16 or f32.
    cdt = w1_ref.dtype

    # h1 + ReLU   (f32 accumulation on the MXU)
    h = jnp.dot(x_ref[...], w1_ref[...], preferred_element_type=jnp.float32)
    h = jnp.maximum(h + b1_ref[...], 0.0)

    # h2 + ReLU
    h = jnp.dot(h.astype(cdt), w2_ref[...], preferred_element_type=jnp.float32)
    h = jnp.maximum(h + b2_ref[...], 0.0)

    # h3 (logits); padded class columns carry a -1e30 bias -> exp() == 0.
    logits = jnp.dot(h.astype(cdt), w3_ref[...],
                     preferred_element_type=jnp.float32) + b3_ref[...]

    # softmax over classes (dim=1 of the original 2-D PyTorch input)
    m = jnp.max(logits, axis=-1, keepdims=True)
    e = jnp.exp(logits - m)
    denom = jnp.sum(e, axis=-1, keepdims=True)
    p = e * pl.reciprocal(denom, approx=True)

    # Hardtanh(tau, 1 - tau) == clamp to [tau, 1-tau]
    o_ref[...] = jnp.clip(p, tau, 1.0 - tau).astype(o_ref.dtype)


@functools.partial(jax.jit, static_argnames=("tau", "tile_b", "use_bf16"))
def mlp_forward(x, params, tau, tile_b=None, use_bf16=True):
    """x: [B, input_size] float32. params: dict of w1,b1,w2,b2,w3,b3."""
    w1, b1 = params["w1"], params["b1"]
    w2, b2 = params["w2"], params["b2"]
    w3, b3 = params["w3"], params["b3"]

    B, in_dim = x.shape
    hid = w1.shape[1]
    ncls = w3.shape[1]

    # --- lane-dense padding of hidden / class dims (exact math) -----------
    hid_p = _round_up(max(hid, _LANE), _LANE)
    ncls_p = _round_up(max(ncls, _LANE), _LANE)

    f32 = jnp.float32
    w1p = jnp.zeros((in_dim, hid_p), f32).at[:, :hid].set(w1)
    b1p = jnp.zeros((1, hid_p), f32).at[:, :hid].set(b1.reshape(1, hid))
    w2p = jnp.zeros((hid_p, hid_p), f32).at[:hid, :hid].set(w2)
    b2p = jnp.zeros((1, hid_p), f32).at[:, :hid].set(b2.reshape(1, hid))
    w3p = jnp.zeros((hid_p, ncls_p), f32).at[:hid, :ncls].set(w3)
    # padded class columns get a huge negative bias so softmax ignores them
    b3p = jnp.full((1, ncls_p), -1e30, f32).at[:, :ncls].set(
        b3.reshape(1, ncls))

    cdt = jnp.bfloat16 if use_bf16 else jnp.float32
    w1p = w1p.astype(cdt)
    w2p = w2p.astype(cdt)
    w3p = w3p.astype(cdt)

    # --- batch tiling: big tiles to amortize per-grid-step overhead -------
    if tile_b is None:
        tile_b = min(512, _round_up(B, 8))
    tile_b = max(8, _round_up(tile_b, 8))
    B_pad = _round_up(B, tile_b)

    # x cast to bf16 in the wrapper halves the HBM read traffic for the only
    # per-tile input.
    x_pad = jnp.zeros((B_pad, in_dim), cdt).at[:B, :].set(x.astype(cdt))

    grid = (B_pad // tile_b,)

    kernel = functools.partial(_mlp_kernel, tau=float(tau))

    out_p = pl.pallas_call(
        kernel,
        out_shape=jax.ShapeDtypeStruct((B_pad, ncls_p), jnp.float32),
        grid_spec=pltpu.PrefetchScalarGridSpec(
            num_scalar_prefetch=0,
            grid=grid,
            in_specs=[
                pl.BlockSpec((tile_b, in_dim), lambda i: (i, 0)),   # x tile
                pl.BlockSpec((in_dim, hid_p), lambda i: (0, 0)),    # w1
                pl.BlockSpec((1, hid_p), lambda i: (0, 0)),         # b1
                pl.BlockSpec((hid_p, hid_p), lambda i: (0, 0)),     # w2
                pl.BlockSpec((1, hid_p), lambda i: (0, 0)),         # b2
                pl.BlockSpec((hid_p, ncls_p), lambda i: (0, 0)),    # w3
                pl.BlockSpec((1, ncls_p), lambda i: (0, 0)),        # b3
            ],
            out_specs=pl.BlockSpec((tile_b, ncls_p), lambda i: (i, 0)),
        ),
        compiler_params=pltpu.CompilerParams(
            dimension_semantics=("parallel",)),
    )(x_pad, w1p, b1p, w2p, b2p, w3p, b3p)

    # slice off batch padding and padded class columns
    return out_p[:B, :ncls]


def init_params(key, input_size, hidden_size, num_classes):
    """Deterministic init matching nn.Linear shapes (stored transposed)."""
    k1, k2, k3, k4, k5, k6 = jax.random.split(key, 6)

    def uniform(k, shape, fan_in):
        bound = 1.0 / jnp.sqrt(fan_in)
        return jax.random.uniform(k, shape, jnp.float32, -bound, bound)

    return {
        # stored as [in, out] (transpose of PyTorch's [out, in])
        "w1": uniform(k1, (input_size, hidden_size), input_size),
        "b1": uniform(k2, (1, hidden_size), input_size),
        "w2": uniform(k3, (hidden_size, hidden_size), hidden_size),
        "b2": uniform(k4, (1, hidden_size), hidden_size),
        "w3": uniform(k5, (hidden_size, num_classes), hidden_size),
        "b3": uniform(k6, (1, num_classes), hidden_size),
    }


def reference_forward(x, params, tau, use_bf16=True):
    """Pure-JAX reference (optionally with the same bf16 matmul casts)."""
    cdt = jnp.bfloat16 if use_bf16 else jnp.float32

    def mm(a, w):
        return jnp.dot(a.astype(cdt), w.astype(cdt),
                       preferred_element_type=jnp.float32)

    h = jnp.maximum(mm(x, params["w1"]) + params["b1"], 0.0)
    h = jnp.maximum(mm(h, params["w2"]) + params["b2"], 0.0)
    logits = mm(h, params["w3"]) + params["b3"]
    p = jax.nn.softmax(logits, axis=1)
    return jnp.clip(p, tau, 1.0 - tau)


if __name__ == "__main__":
    input_size, hidden_size, num_classes = 32, 64, 16
    tau = 0.1
    batch = 8

    key = jax.random.PRNGKey(0)
    kx, kp = jax.random.split(key)
    x = jax.random.normal(kx, (batch, input_size), jnp.float32)
    params = init_params(kp, input_size, hidden_size, num_classes)

    out = jax.block_until_ready(mlp_forward(x, params, tau))
    assert out.shape == (batch, num_classes)

    # tight check against a reference using identical bf16 matmul casts
    ref_matched = reference_forward(x, params, tau, use_bf16=True)
    assert jnp.allclose(out, ref_matched, atol=1e-3, rtol=1e-3), \
        "mismatch vs bf16-matched reference"

    # loose check against the exact-f32 PyTorch-equivalent semantics
    ref_f32 = reference_forward(x, params, tau, use_bf16=False)
    assert jnp.allclose(out, ref_f32, atol=3e-2, rtol=3e-2), \
        "mismatch vs f32 reference"

    print("KERNEL_OK")
</pallas_src>

<mosaic_0001>
module attributes {stable_mosaic.version = 11 : i64} {
  func.func @_mlp_kernel(%arg0: i32, %arg1: memref<8x32xbf16, #tpu.memory_space<vmem>>, %arg2: memref<32x128xbf16, #tpu.memory_space<vmem>>, %arg3: memref<1x128xf32, #tpu.memory_space<vmem>>, %arg4: memref<128x128xbf16, #tpu.memory_space<vmem>>, %arg5: memref<1x128xf32, #tpu.memory_space<vmem>>, %arg6: memref<128x128xbf16, #tpu.memory_space<vmem>>, %arg7: memref<1x128xf32, #tpu.memory_space<vmem>>, %arg8: memref<8x128xf32, #tpu.memory_space<vmem>>) attributes {dimension_semantics = [#tpu.dimension_semantics<parallel>], iteration_bounds = array<i64: 1>, scalar_prefetch = 0 : i64, scratch_operands = 0 : i64, tpu.core_type = #tpu.core_type<tc>, window_params = [{transform_indices = @transform_0, window_bounds = array<i64: 8, 32>}, {pipeline_mode = #tpu.pipeline_mode<synchronous>, transform_indices = @transform_1, window_bounds = array<i64: 32, 128>}, {pipeline_mode = #tpu.pipeline_mode<synchronous>, transform_indices = @transform_2, window_bounds = array<i64: 1, 128>}, {pipeline_mode = #tpu.pipeline_mode<synchronous>, transform_indices = @transform_3, window_bounds = array<i64: 128, 128>}, {pipeline_mode = #tpu.pipeline_mode<synchronous>, transform_indices = @transform_4, window_bounds = array<i64: 1, 128>}, {pipeline_mode = #tpu.pipeline_mode<synchronous>, transform_indices = @transform_5, window_bounds = array<i64: 128, 128>}, {pipeline_mode = #tpu.pipeline_mode<synchronous>, transform_indices = @transform_6, window_bounds = array<i64: 1, 128>}, {transform_indices = @transform_7, window_bounds = array<i64: 8, 128>}]} {
    %c0 = arith.constant 0 : index
    %c0_0 = arith.constant 0 : index
    %0 = vector.load %arg1[%c0, %c0_0] : memref<8x32xbf16, #tpu.memory_space<vmem>>, vector<8x32xbf16>
    %c0_1 = arith.constant 0 : index
    %c0_2 = arith.constant 0 : index
    %1 = vector.load %arg2[%c0_1, %c0_2] : memref<32x128xbf16, #tpu.memory_space<vmem>>, vector<32x128xbf16>
    %cst = arith.constant dense<0.000000e+00> : vector<8x128xf32>
    %2 = tpu.matmul %0, %1, %cst {dimension_numbers = #tpu.dot_dimension_numbers<[1], [0], [0], [1], [0, 0, 1, 1], [], []>} : vector<8x32xbf16>, vector<32x128xbf16>, vector<8x128xf32> -> vector<8x128xf32>
    %c0_3 = arith.constant 0 : index
    %c0_4 = arith.constant 0 : index
    %3 = vector.load %arg3[%c0_3, %c0_4] : memref<1x128xf32, #tpu.memory_space<vmem>>, vector<1x128xf32>
    %4 = vector.broadcast %3 : vector<1x128xf32> to vector<8x128xf32>
    %5 = arith.addf %2, %4 : vector<8x128xf32>
    %cst_5 = arith.constant 0.000000e+00 : f32
    %6 = vector.broadcast %cst_5 : f32 to vector<8x128xf32>
    %7 = arith.maximumf %5, %6 : vector<8x128xf32>
    %8 = arith.truncf %7 : vector<8x128xf32> to vector<8x128xbf16>
    %c0_6 = arith.constant 0 : index
    %c0_7 = arith.constant 0 : index
    %9 = vector.load %arg4[%c0_6, %c0_7] : memref<128x128xbf16, #tpu.memory_space<vmem>>, vector<128x128xbf16>
    %cst_8 = arith.constant dense<0.000000e+00> : vector<8x128xf32>
    %10 = tpu.matmul %8, %9, %cst_8 {dimension_numbers = #tpu.dot_dimension_numbers<[1], [0], [0], [1], [0, 0, 1, 1], [], []>} : vector<8x128xbf16>, vector<128x128xbf16>, vector<8x128xf32> -> vector<8x128xf32>
    %c0_9 = arith.constant 0 : index
    %c0_10 = arith.constant 0 : index
    %11 = vector.load %arg5[%c0_9, %c0_10] : memref<1x128xf32, #tpu.memory_space<vmem>>, vector<1x128xf32>
    %12 = vector.broadcast %11 : vector<1x128xf32> to vector<8x128xf32>
    %13 = arith.addf %10, %12 : vector<8x128xf32>
    %cst_11 = arith.constant 0.000000e+00 : f32
    %14 = vector.broadcast %cst_11 : f32 to vector<8x128xf32>
    %15 = arith.maximumf %13, %14 : vector<8x128xf32>
    %16 = arith.truncf %15 : vector<8x128xf32> to vector<8x128xbf16>
    %c0_12 = arith.constant 0 : index
    %c0_13 = arith.constant 0 : index
    %17 = vector.load %arg6[%c0_12, %c0_13] : memref<128x128xbf16, #tpu.memory_space<vmem>>, vector<128x128xbf16>
    %cst_14 = arith.constant dense<0.000000e+00> : vector<8x128xf32>
    %18 = tpu.matmul %16, %17, %cst_14 {dimension_numbers = #tpu.dot_dimension_numbers<[1], [0], [0], [1], [0, 0, 1, 1], [], []>} : vector<8x128xbf16>, vector<128x128xbf16>, vector<8x128xf32> -> vector<8x128xf32>
    %c0_15 = arith.constant 0 : index
    %c0_16 = arith.constant 0 : index
    %19 = vector.load %arg7[%c0_15, %c0_16] : memref<1x128xf32, #tpu.memory_space<vmem>>, vector<1x128xf32>
    %20 = vector.broadcast %19 : vector<1x128xf32> to vector<8x128xf32>
    %21 = arith.addf %18, %20 : vector<8x128xf32>
    %cst_17 = arith.constant dense<0xFF800000> : vector<8xf32>
    %22 = vector.multi_reduction <maximumf>, %21, %cst_17 [1] : vector<8x128xf32> to vector<8xf32>
    %23 = vector.shape_cast %22 : vector<8xf32> to vector<8x1xf32>
    %24 = vector.broadcast %23 : vector<8x1xf32> to vector<8x128xf32>
    %25 = arith.subf %21, %24 : vector<8x128xf32>
    %26 = math.exp %25 : vector<8x128xf32>
    %cst_18 = arith.constant dense<0.000000e+00> : vector<8xf32>
    %27 = vector.multi_reduction <add>, %26, %cst_18 [1] : vector<8x128xf32> to vector<8xf32>
    %28 = vector.shape_cast %27 : vector<8xf32> to vector<8x1xf32>
    %29 = tpu.reciprocal %28 {approx = true} : vector<8x1xf32> -> vector<8x1xf32>
    %30 = vector.broadcast %29 : vector<8x1xf32> to vector<8x128xf32>
    %31 = arith.mulf %26, %30 : vector<8x128xf32>
    %cst_19 = arith.constant 1.000000e-01 : f32
    %cst_20 = arith.constant 0.899999976 : f32
    %32 = vector.broadcast %cst_19 : f32 to vector<8x128xf32>
    %33 = arith.maximumf %32, %31 : vector<8x128xf32>
    %34 = vector.broadcast %cst_20 : f32 to vector<8x128xf32>
    %35 = arith.minimumf %34, %33 : vector<8x128xf32>
    %c0_21 = arith.constant 0 : index
    %c0_22 = arith.constant 0 : index
    %36 = vector.load %arg8[%c0_21, %c0_22] : memref<8x128xf32, #tpu.memory_space<vmem>>, vector<8x128xf32>
    tpu.vector_store %arg8[%c0_21, %c0_22], %35 {strides = array<i32>} : memref<8x128xf32, #tpu.memory_space<vmem>>, vector<8x128xf32>,
    return
  }
  func.func @transform_0(%arg0: i32) -> (i32, i32) {
    %c0_i32 = arith.constant 0 : i32
    %c0_i32_0 = arith.constant 0 : i32
    return %arg0, %c0_i32 : i32, i32
  }
  func.func @transform_1(%arg0: i32) -> (i32, i32) {
    %c0_i32 = arith.constant 0 : i32
    %c0_i32_0 = arith.constant 0 : i32
    %c0_i32_1 = arith.constant 0 : i32
    return %c0_i32, %c0_i32_0 : i32, i32
  }
  func.func @transform_2(%arg0: i32) -> (i32, i32) {
    %c0_i32 = arith.constant 0 : i32
    %c0_i32_0 = arith.constant 0 : i32
    %c0_i32_1 = arith.constant 0 : i32
    return %c0_i32, %c0_i32_0 : i32, i32
  }
  func.func @transform_3(%arg0: i32) -> (i32, i32) {
    %c0_i32 = arith.constant 0 : i32
    %c0_i32_0 = arith.constant 0 : i32
    %c0_i32_1 = arith.constant 0 : i32
    return %c0_i32, %c0_i32_0 : i32, i32
  }
  func.func @transform_4(%arg0: i32) -> (i32, i32) {
    %c0_i32 = arith.constant 0 : i32
    %c0_i32_0 = arith.constant 0 : i32
    %c0_i32_1 = arith.constant 0 : i32
    return %c0_i32, %c0_i32_0 : i32, i32
  }
  func.func @transform_5(%arg0: i32) -> (i32, i32) {
    %c0_i32 = arith.constant 0 : i32
    %c0_i32_0 = arith.constant 0 : i32
    %c0_i32_1 = arith.constant 0 : i32
    return %c0_i32, %c0_i32_0 : i32, i32
  }
  func.func @transform_6(%arg0: i32) -> (i32, i32) {
    %c0_i32 = arith.constant 0 : i32
    %c0_i32_0 = arith.constant 0 : i32
    %c0_i32_1 = arith.constant 0 : i32
    return %c0_i32, %c0_i32_0 : i32, i32
  }
  func.func @transform_7(%arg0: i32) -> (i32, i32) {
    %c0_i32 = arith.constant 0 : i32
    %c0_i32_0 = arith.constant 0 : i32
    return %arg0, %c0_i32 : i32, i32
  }
}

</mosaic_0001>

<bundles_post_ra>
// kernel: mlp_forward.1
= control target key start
LH: loop header
LB: loop body
LE: loop exit
PB: predicated region body
PF: predicated region fallthrough
CT: control target
= control target key end

     0   :  { %v486_v1 = vmov 0.0   ;;  %vm487_vm0 = vmmov 0   ;;  %vm52_vm1 = vcmask 261120   ;;  %s622_s0 = inlined_call_operand.vmem [shape: bf16[8,32], index: 0, kind: input, shape index: {}]   ;;  %s623_s1 = inlined_call_operand.vmem [shape: bf16[32,128], index: 1, kind: input, shape index: {}]   ;;  %s624_s2 = inlined_call_operand.vmem [shape: f32[1,128], index: 2, kind: input, shape index: {}]   ;;  %s625_s3 = inlined_call_operand.vmem [shape: bf16[128,128], index: 3, kind: input, shape index: {}]   ;;  %s626_s4 = inlined_call_operand.vmem [shape: f32[1,128], index: 4, kind: input, shape index: {}]   ;;  %s627_s5 = inlined_call_operand.vmem [shape: bf16[128,128], index: 5, kind: input, shape index: {}]   ;;  %s628_s6 = inlined_call_operand.vmem [shape: f32[1,128], index: 6, kind: input, shape index: {}]   ;;  %s629_s7 = inlined_call_operand.hbm [shape: f32[8,128], index: 7, kind: output, shape index: {}]  }
   0x1   :  { %v442_v0 = vld [vmem:[%s623_s1 + $0x8] sm:$0xff]   ;;  %391 = vmatprep.subr.bf16.mxu0 %v486_v1  ;;  %399 = vmatprep.subr.bf16.mxu1 %v486_v1  ;;  %v443_v2 = vld [vmem:[%s623_s1] sm:$0xff]   ;;  %v444_v3 = vld [vmem:[%s625_s3 + $0x38] sm:$0xff]  }
   0x2   :  { %392 = vmatpush3.bf16.msra.mxu0 %v442_v0  ;;  %395 = vmatprep.mubr.msk.bf16.mxu0 %vm487_vm0, %v486_v1  ;;  %v445_v4 = vld [vmem:[%s625_s3 + $0x30] sm:$0xff]   ;;  %v28_v5 = vld [vmem:[%s622_s0] sm:$0xf]  ;;  %v446_v6 = vld [vmem:[%s625_s3 + $0x28] sm:$0xff]  }
   0x3   :  { %393 = vmatprep.subr.bf16.mxu0 %v486_v1  ;;  %415 = vmatprep.mubr.msk.bf16.mxu1 %vm487_vm0, %v486_v1  ;;  %v447_v7 = vld [vmem:[%s625_s3 + $0x20] sm:$0xff]  }
   0x4   :  { %400 = vmatpush3.bf16.msra.mxu1 %v444_v3 }
   0x5   :  { %401 = vmatprep.subr.bf16.mxu1 %v486_v1 }
   0x6   :  { %394 = vmatpush3.bf16.msra.mxu0 %v443_v2 }
   0x7   :  { %419 = vmatprep.subr.bf16.mxu0 %v486_v1 }
   0x8   :  { %402 = vmatpush3.bf16.msra.mxu1 %v445_v4 }
   0x9   :  { %396 = vmatmul.mubr.msk.bf16.vlgmr.msra.gmra.mxu0 %vm52_vm1, %v28_v5  ;;  %403 = vmatprep.subr.bf16.mxu1 %v486_v1 }
   0xa   :  { %435 = vmatprep.mubr.msk.bf16.mxu0 %vm487_vm0, %v486_v1 }
   0xc   :  { %404 = vmatpush3.bf16.msra.mxu1 %v446_v6 }
   0xd   :  { %405 = vmatprep.subr.bf16.mxu1 %v486_v1 }
   0xe   :  { %12 = vsyncpa [#allocation3], 0  ;;  %v448_v8 = vld [vmem:[%s625_s3 + $0x18] sm:$0xff]   ;;  %v449_v9 = vld [vmem:[%s625_s3 + $0x10] sm:$0xff]  }
   0xf   :  { %v450_v10 = vld [vmem:[%s625_s3 + $0x8] sm:$0xff]   ;;  %v451_v11 = vld [vmem:[%s625_s3] sm:$0xff]   ;;  %v452_v12 = vld [vmem:[%s627_s5 + $0x38] sm:$0xff]  }
  0x10   :  { %406 = vmatpush3.bf16.msra.mxu1 %v447_v7  ;;  %420 = vmatpush3.bf16.msra.mxu0 %v452_v12  ;;  %v453_v13 = vld [vmem:[%s627_s5 + $0x30] sm:$0xff]   ;;  %v454_v14 = vld [vmem:[%s627_s5 + $0x28] sm:$0xff]   ;;  %v455_v15 = vld [vmem:[%s627_s5 + $0x20] sm:$0xff]  }
  0x11   :  { %407 = vmatprep.subr.bf16.mxu1 %v486_v1  ;;  %421 = vmatprep.subr.bf16.mxu0 %v486_v1  ;;  %v456_v16 = vld [vmem:[%s627_s5 + $0x18] sm:$0xff]   ;;  %v457_v17 = vld [vmem:[%s627_s5 + $0x10] sm:$0xff]   ;;  %v348_v18 = vld [vmem:[%s624_s2] ss:$0 sm:$0xff] }
  0x12   :  { %v458_v26 = vld [vmem:[%s627_s5 + $0x8] sm:$0xff]   ;;  %v459_v27 = vld [vmem:[%s627_s5] sm:$0xff]  }
  0x13   :  { %v352_v28 = vld [vmem:[%s626_s4] ss:$0 sm:$0xff]  ;;  %s488_s4 = smov [#allocation2]  }
  0x14   :  { %408 = vmatpush3.bf16.msra.mxu1 %v448_v8  ;;  %422 = vmatpush3.bf16.msra.mxu0 %v453_v13  ;;  %v361_v36 = vld [vmem:[%s628_s6] ss:$0 sm:$0xff]  ;;  %s340_s5 = sshll.u32 %s488_s4, 4  ;;  %s341_s5 = int_to_ptr.vmem [resolvable:$true] %s340_s5 }
  0x15   :  { %409 = vmatprep.subr.bf16.mxu1 %v486_v1  ;;  %423 = vmatprep.subr.bf16.mxu0 %v486_v1  ;;  %s464_s6 = scalar_lea.vmem %s341_s5, 128  ;;  %p469_p1 = scmp.lt.s32.totalorder %s341_s5, %s341_s5 }
  0x16   :  { %p465_p0 = scmp.ne.s32.totalorder %s341_s5, %s464_s6  ;;  %p470_p2 = scmp.lt.s32.totalorder %s464_s6, %s464_s6 }
  0x18   :  { %410 = vmatpush3.bf16.msra.mxu1 %v449_v9  ;;  %424 = vmatpush3.bf16.msra.mxu0 %v454_v14  ;;  %p471_p3 = por %p470_p2, %p469_p1 }
  0x19   :  { %411 = vmatprep.subr.bf16.mxu1 %v486_v1  ;;  %425 = vmatprep.subr.bf16.mxu0 %v486_v1 }
  0x1a   :  { %p472_p4 = pnand %p471_p3, %p465_p0 }
  0x1c   :  { %412 = vmatpush3.bf16.msra.mxu1 %v450_v10  ;;  %426 = vmatpush3.bf16.msra.mxu0 %v455_v15 }
  0x1d   :  { %413 = vmatprep.subr.bf16.mxu1 %v486_v1  ;;  %427 = vmatprep.subr.bf16.mxu0 %v486_v1 }
  0x20   :  { %414 = vmatpush3.bf16.msra.mxu1 %v451_v11  ;;  %428 = vmatpush3.bf16.msra.mxu0 %v456_v16 }
  0x21   :  { %429 = vmatprep.subr.bf16.mxu0 %v486_v1 }
  0x24   :  { %430 = vmatpush3.bf16.msra.mxu0 %v457_v17 }
  0x25   :  { %431 = vmatprep.subr.bf16.mxu0 %v486_v1 }
  0x28   :  { %432 = vmatpush3.bf16.msra.mxu0 %v458_v26 }
  0x29   :  { %433 = vmatprep.subr.bf16.mxu0 %v486_v1 }
  0x2c   :  { %434 = vmatpush3.bf16.msra.mxu0 %v459_v27 }
  0xc9   :  { %v90_v19 = vpop.f32.mrf.mxu0 }
  0xca   :  { %v91_v20 = vadd.f32 %v348_v18, %v90_v19 }
  0xcb   :  { %v397_v21 = vpop.f32.mrf.mxu0 }
  0xcc   :  { %v96_v22 = vmax.f32 %v91_v20, 0.0 }
  0xcd   :  { %v93_v23 = vpop.f32.mrf.mxu0 }
  0xce   :  { %v97_v24 = vpack.c.bf16 %v96_v22, %v96_v22 }
  0xcf   :  { %v398_v25 = vpop.f32.mrf.mxu0 }
  0xd0   :  { %416 = vmatmul.mubr.bf16.vlgmr.msra.gmra.mxu1 %v97_v24 }
 0x190   :  { %v203_v29 = vpop.f32.mrf.mxu1 }
 0x191   :  { %v204_v30 = vadd.f32 %v352_v28, %v203_v29 }
 0x192   :  { %v417_v31 = vpop.f32.mrf.mxu1 }
 0x193   :  { %v209_v32 = vmax.f32 %v204_v30, 0.0 }
 0x194   :  { %v206_v33 = vpop.f32.mrf.mxu1 }
 0x195   :  { %v210_v34 = vpack.c.bf16 %v209_v32, %v209_v32 }
 0x196   :  { %v418_v35 = vpop.f32.mrf.mxu1 }
 0x197   :  { %436 = vmatmul.mubr.bf16.vlgmr.msra.gmra.mxu0 %v210_v34 }
 0x257   :  { %v316_v37 = vpop.f32.mrf.mxu0 }
 0x258   :  { %v317_v38 = vadd.f32 %v361_v36, %v316_v37 }
 0x259   :  { %v437_v39 = vpop.f32.mrf.mxu0 }
 0x25a   :  { %322 = vmax.xlane.f32.xlu0 %v317_v38 }
 0x25b   :  { %v319_v40 = vpop.f32.mrf.mxu0 }
 0x25d   :  { %v438_v41 = vpop.f32.mrf.mxu0 }
 0x2e3   :  { %v323_v42 = vpop.xlane.xlu0 %322 }
 0x2e4   :  { %v324_v43 = vsub.f32 %v317_v38, %v323_v42 }
 0x2e6   :  { %v325_v44 = vmul.f32 1.442695, %v324_v43 }
 0x2e8   :  { %460 = vpow2.f32 %v325_v44 }
 0x2f5   :  { %v461_v45 = vpop.eup %460 }
 0x2f6   :  { %327 = vadd.xlane.f32.xlu0 %v461_v45 }
 0x37f   :  { %v328_v46 = vpop.xlane.xlu0 %327 }
 0x380   :  { %462 = vrcp.f32 %v328_v46 }
 0x38d   :  { %v463_v47 = vpop.eup %462 }
 0x38e   :  { %v330_v48 = vmul.f32 %v463_v47, %v461_v45 }
 0x390   :  { %v331_v49 = vmax.f32 %v330_v48, 0.1 }
 0x392   :  { %v332_v50 = vmin.f32 %v331_v49, 0.9 }
 0x394   :  { %333 = vst [vmem:[#allocation2] sm:$0xff] %v332_v50 }
 0x395   :  { %475 = shalt.err (!%p472_p4)
}
 0x396   :  { %343 = dma.vmem_to_hbm [thread:$0]  %s341_s5, 128, %s629_s7, [#allocation3]  }
 0x397   :  { %484 = dma.done.wait [#allocation3], 128  }
 0x398   :  { %485 = vsyncadd [#allocation3], 4294967168 }
 0x399   :  { %347 = vsyncpa [#allocation3], 1 }

</bundles_post_ra>
